<compile_context>
chip_gen: v7x
topology: tpu7x:2x2x1
jax: 0.10.0
libtpu: 0.0.40
codegen_flags: <defaults>
</compile_context>

<pallas_src>
import jax
import jax.numpy as jnp
from jax.experimental import pallas as pl
from jax.experimental.pallas import tpu as pltpu


def _attention_kernel(x_ref, w1_ref, b1_ref, w2_ref, b2_ref, o_ref):
    # x_ref: (TB, K) f32.  w*_ref: (K, K) f32, VMEM-resident.  b*_ref: (K, 1) f32.
    # o_ref: (1, TB) f32 — lane-dense output block.
    x = x_ref[...]                                             # (TB, K)
    K = x.shape[1]

    # Lane-dense "transpose" of x done on the idle MXU (same transposed-RHS
    # matmul pattern as q @ k.T):  xT = I_K @ x^T.
    row = jax.lax.broadcasted_iota(jnp.int32, (K, K), 0)
    col = jax.lax.broadcasted_iota(jnp.int32, (K, K), 1)
    eye = (row == col).astype(jnp.float32)                     # (K, K)
    xT = jnp.dot(eye, x.T, preferred_element_type=jnp.float32)  # (K, TB)

    # hT = relu(W1 @ x^T + b1).  PyTorch Linear weight is [out, in], so
    # (x @ W1^T)^T == W1 @ x^T — no weight transpose needed in this layout.
    hT = jnp.dot(w1_ref[...], x.T, preferred_element_type=jnp.float32)
    hT = jnp.maximum(hT + b1_ref[...], 0.0)                    # (K, TB)

    # sT = W2 @ hT + b2
    sT = jnp.dot(w2_ref[...], hT, preferred_element_type=jnp.float32) + b2_ref[...]

    # Numerically-stable softmax over K (sublane axis), fused with the
    # weighted sum:  out = sum_k(e_k * x_k) / sum_k(e_k).  All math stays f32.
    m = jnp.max(sT, axis=0, keepdims=True)                     # (1, TB)
    e = jnp.exp(sT - m)                                        # (K, TB)
    num = jnp.sum(e * xT, axis=0, keepdims=True)               # (1, TB)
    den = jnp.sum(e, axis=0, keepdims=True)                    # (1, TB)
    o_ref[...] = num * pl.reciprocal(den, approx=True)         # EUP vrcp, lane-dense store


def prepare_params(w1, b1, w2, b2):
    """One-time parameter prep.

    Weights stay in PyTorch's native [out, in] layout (the transposed kernel
    computes W @ x^T directly, so no transpose is needed) and stay f32 (the MXU
    is not the bottleneck at K=32).  Biases become (K, 1) columns.
    """
    K = w1.shape[0]
    return (jnp.asarray(w1, jnp.float32),
            jnp.asarray(b1, jnp.float32).reshape(K, 1),
            jnp.asarray(w2, jnp.float32),
            jnp.asarray(b2, jnp.float32).reshape(K, 1))


def _round_up(n, m):
    return ((n + m - 1) // m) * m


def _pick_tb(B, max_tb=4096):
    """Batch-tile size: the full batch for tiny B (single block = full-array
    dims, always legal), otherwise a multiple of 128 targeting >=4 grid steps
    (v7x: >=2 per TensorCore), capped at max_tb (VMEM use stays ~1-3 MiB)."""
    if B <= 128:
        return B
    return min(max_tb, max(128, _round_up(-(-B // 4), 128)))


def attention_layer(x, w1, b1_col, w2, b2_col, *, max_tb=4096):
    """x: [B, K] f32.  w*: [K, K] f32 (PyTorch [out, in] layout).  b*_col: [K, 1] f32."""
    x = jnp.asarray(x, jnp.float32)
    B, K = x.shape
    tb = _pick_tb(B, max_tb)
    n_tiles = pl.cdiv(B, tb)

    out = pl.pallas_call(
        _attention_kernel,
        out_shape=jax.ShapeDtypeStruct((1, B), jnp.float32),
        grid=(n_tiles,),
        in_specs=[
            pl.BlockSpec((tb, K), lambda i: (i, 0)),   # x tile — pipelined / double-buffered
            pl.BlockSpec((K, K), lambda i: (0, 0)),    # W1 — VMEM-resident across grid
            pl.BlockSpec((K, 1), lambda i: (0, 0)),    # b1
            pl.BlockSpec((K, K), lambda i: (0, 0)),    # W2
            pl.BlockSpec((K, 1), lambda i: (0, 0)),    # b2
        ],
        out_specs=pl.BlockSpec((1, tb), lambda i: (0, i)),     # lane-dense output
        compiler_params=pltpu.CompilerParams(
            dimension_semantics=("parallel",),         # v7x shards the batch over 2 TCs
        ),
    )(x, w1, b1_col, w2, b2_col)
    return out.reshape(B, 1)


def _reference(x, w1, b1, w2, b2):
    h = jax.nn.relu(x @ w1.T + b1)
    s = h @ w2.T + b2
    a = jax.nn.softmax(s, axis=1)
    return jnp.sum(a * x, axis=1, keepdims=True)


if __name__ == "__main__":
    K = 32
    key = jax.random.PRNGKey(0)
    kx, kw1, kw2, kb1, kb2, kx2 = jax.random.split(key, 6)

    # Module's init_weight(): weights ~ U(-0.05, 0.05), biases = 0.
    w1 = jax.random.uniform(kw1, (K, K), minval=-0.05, maxval=0.05, dtype=jnp.float32)
    b1 = jnp.zeros((K,), jnp.float32)
    w2 = jax.random.uniform(kw2, (K, K), minval=-0.05, maxval=0.05, dtype=jnp.float32)
    b2 = jnp.zeros((K,), jnp.float32)
    params = prepare_params(w1, b1, w2, b2)

    # Case 1: tiny batch like the module docstring (single full-array block).
    x_small = jax.random.normal(kx, (2, K), dtype=jnp.float32)
    out_small = attention_layer(x_small, *params)
    jax.block_until_ready(out_small)
    ref_small = _reference(x_small, w1, b1, w2, b2)
    assert out_small.shape == (2, 1), out_small.shape
    assert jnp.allclose(out_small, ref_small, atol=5e-3, rtol=5e-3), (out_small, ref_small)

    # Case 2: multi-tile batch with a ragged tail — exercises the grid, resident
    # weights, pipelining and Pallas edge-block masking (no jnp.pad copies).
    B = 300
    x_big = jax.random.normal(kx2, (B, K), dtype=jnp.float32)
    out_big = attention_layer(x_big, *params)
    jax.block_until_ready(out_big)
    ref_big = _reference(x_big, w1, b1, w2, b2)
    assert out_big.shape == (B, 1), out_big.shape
    assert jnp.allclose(out_big, ref_big, atol=5e-3, rtol=5e-3), (out_big, ref_big)

    # Case 3: nonzero biases (validates the full Linear path, not just the matmuls).
    b1_r = jax.random.normal(kb1, (K,), dtype=jnp.float32) * 0.1
    b2_r = jax.random.normal(kb2, (K,), dtype=jnp.float32) * 0.1
    params_r = prepare_params(w1, b1_r, w2, b2_r)
    out_r = attention_layer(x_big, *params_r)
    jax.block_until_ready(out_r)
    ref_r = _reference(x_big, w1, b1_r, w2, b2_r)
    assert jnp.allclose(out_r, ref_r, atol=5e-3, rtol=5e-3), (out_r, ref_r)

    print("KERNEL_OK")
</pallas_src>

<mosaic_0001>
module attributes {stable_mosaic.version = 11 : i64} {
  func.func @_attention_kernel(%arg0: i32, %arg1: memref<2x32xf32, #tpu.memory_space<vmem>>, %arg2: memref<32x32xf32, #tpu.memory_space<vmem>>, %arg3: memref<32x1xf32, #tpu.memory_space<vmem>>, %arg4: memref<32x32xf32, #tpu.memory_space<vmem>>, %arg5: memref<32x1xf32, #tpu.memory_space<vmem>>, %arg6: memref<1x2xf32, #tpu.memory_space<vmem>>) attributes {dimension_semantics = [#tpu.dimension_semantics<parallel>], iteration_bounds = array<i64: 1>, scalar_prefetch = 0 : i64, scratch_operands = 0 : i64, tpu.core_type = #tpu.core_type<tc>, window_params = [{transform_indices = @transform_0, window_bounds = array<i64: 2, 32>}, {pipeline_mode = #tpu.pipeline_mode<synchronous>, transform_indices = @transform_1, window_bounds = array<i64: 32, 32>}, {pipeline_mode = #tpu.pipeline_mode<synchronous>, transform_indices = @transform_2, window_bounds = array<i64: 32, 1>}, {pipeline_mode = #tpu.pipeline_mode<synchronous>, transform_indices = @transform_3, window_bounds = array<i64: 32, 32>}, {pipeline_mode = #tpu.pipeline_mode<synchronous>, transform_indices = @transform_4, window_bounds = array<i64: 32, 1>}, {transform_indices = @transform_5, window_bounds = array<i64: 1, 2>}]} {
    %c0 = arith.constant 0 : index
    %c0_0 = arith.constant 0 : index
    %0 = vector.load %arg1[%c0, %c0_0] : memref<2x32xf32, #tpu.memory_space<vmem>>, vector<2x32xf32>
    %1 = tpu.iota {dimensions = array<i32: 0>} : vector<32x32xi32>
    %2 = tpu.iota {dimensions = array<i32: 1>} : vector<32x32xi32>
    %3 = arith.cmpi eq, %1, %2 : vector<32x32xi32>
    %4 = arith.extui %3 : vector<32x32xi1> to vector<32x32xi32>
    %5 = arith.sitofp %4 : vector<32x32xi32> to vector<32x32xf32>
    %6 = tpu.transpose %0, [1, 0] : vector<2x32xf32> -> vector<32x2xf32>
    %cst = arith.constant dense<0.000000e+00> : vector<32x2xf32>
    %7 = tpu.matmul %5, %6, %cst {dimension_numbers = #tpu.dot_dimension_numbers<[1], [0], [0], [1], [0, 0, 1, 1], [], []>} : vector<32x32xf32>, vector<32x2xf32>, vector<32x2xf32> -> vector<32x2xf32>
    %c0_1 = arith.constant 0 : index
    %c0_2 = arith.constant 0 : index
    %8 = vector.load %arg2[%c0_1, %c0_2] : memref<32x32xf32, #tpu.memory_space<vmem>>, vector<32x32xf32>
    %9 = tpu.transpose %0, [1, 0] : vector<2x32xf32> -> vector<32x2xf32>
    %cst_3 = arith.constant dense<0.000000e+00> : vector<32x2xf32>
    %10 = tpu.matmul %8, %9, %cst_3 {dimension_numbers = #tpu.dot_dimension_numbers<[1], [0], [0], [1], [0, 0, 1, 1], [], []>} : vector<32x32xf32>, vector<32x2xf32>, vector<32x2xf32> -> vector<32x2xf32>
    %c0_4 = arith.constant 0 : index
    %c0_5 = arith.constant 0 : index
    %11 = vector.load %arg3[%c0_4, %c0_5] : memref<32x1xf32, #tpu.memory_space<vmem>>, vector<32x1xf32>
    %12 = vector.broadcast %11 : vector<32x1xf32> to vector<32x2xf32>
    %13 = arith.addf %10, %12 : vector<32x2xf32>
    %cst_6 = arith.constant 0.000000e+00 : f32
    %14 = vector.broadcast %cst_6 : f32 to vector<32x2xf32>
    %15 = arith.maximumf %13, %14 : vector<32x2xf32>
    %c0_7 = arith.constant 0 : index
    %c0_8 = arith.constant 0 : index
    %16 = vector.load %arg4[%c0_7, %c0_8] : memref<32x32xf32, #tpu.memory_space<vmem>>, vector<32x32xf32>
    %cst_9 = arith.constant dense<0.000000e+00> : vector<32x2xf32>
    %17 = tpu.matmul %16, %15, %cst_9 {dimension_numbers = #tpu.dot_dimension_numbers<[1], [0], [0], [1], [0, 0, 1, 1], [], []>} : vector<32x32xf32>, vector<32x2xf32>, vector<32x2xf32> -> vector<32x2xf32>
    %c0_10 = arith.constant 0 : index
    %c0_11 = arith.constant 0 : index
    %18 = vector.load %arg5[%c0_10, %c0_11] : memref<32x1xf32, #tpu.memory_space<vmem>>, vector<32x1xf32>
    %19 = vector.broadcast %18 : vector<32x1xf32> to vector<32x2xf32>
    %20 = arith.addf %17, %19 : vector<32x2xf32>
    %cst_12 = arith.constant dense<0xFF800000> : vector<2xf32>
    %21 = vector.multi_reduction <maximumf>, %20, %cst_12 [0] : vector<32x2xf32> to vector<2xf32>
    %22 = vector.shape_cast %21 : vector<2xf32> to vector<1x2xf32>
    %23 = vector.broadcast %22 : vector<1x2xf32> to vector<32x2xf32>
    %24 = arith.subf %20, %23 : vector<32x2xf32>
    %25 = math.exp %24 : vector<32x2xf32>
    %26 = arith.mulf %25, %7 : vector<32x2xf32>
    %cst_13 = arith.constant dense<0.000000e+00> : vector<2xf32>
    %27 = vector.multi_reduction <add>, %26, %cst_13 [0] : vector<32x2xf32> to vector<2xf32>
    %28 = vector.shape_cast %27 : vector<2xf32> to vector<1x2xf32>
    %cst_14 = arith.constant dense<0.000000e+00> : vector<2xf32>
    %29 = vector.multi_reduction <add>, %25, %cst_14 [0] : vector<32x2xf32> to vector<2xf32>
    %30 = vector.shape_cast %29 : vector<2xf32> to vector<1x2xf32>
    %31 = tpu.reciprocal %30 {approx = true} : vector<1x2xf32> -> vector<1x2xf32>
    %32 = arith.mulf %28, %31 : vector<1x2xf32>
    %c0_15 = arith.constant 0 : index
    %c0_16 = arith.constant 0 : index
    %33 = vector.load %arg6[%c0_15, %c0_16] : memref<1x2xf32, #tpu.memory_space<vmem>>, vector<1x2xf32>
    tpu.vector_store %arg6[%c0_15, %c0_16], %32 {strides = array<i32>} : memref<1x2xf32, #tpu.memory_space<vmem>>, vector<1x2xf32>,
    return
  }
  func.func @transform_0(%arg0: i32) -> (i32, i32) {
    %c0_i32 = arith.constant 0 : i32
    %c0_i32_0 = arith.constant 0 : i32
    return %arg0, %c0_i32 : i32, i32
  }
  func.func @transform_1(%arg0: i32) -> (i32, i32) {
    %c0_i32 = arith.constant 0 : i32
    %c0_i32_0 = arith.constant 0 : i32
    %c0_i32_1 = arith.constant 0 : i32
    return %c0_i32, %c0_i32_0 : i32, i32
  }
  func.func @transform_2(%arg0: i32) -> (i32, i32) {
    %c0_i32 = arith.constant 0 : i32
    %c0_i32_0 = arith.constant 0 : i32
    %c0_i32_1 = arith.constant 0 : i32
    return %c0_i32, %c0_i32_0 : i32, i32
  }
  func.func @transform_3(%arg0: i32) -> (i32, i32) {
    %c0_i32 = arith.constant 0 : i32
    %c0_i32_0 = arith.constant 0 : i32
    %c0_i32_1 = arith.constant 0 : i32
    return %c0_i32, %c0_i32_0 : i32, i32
  }
  func.func @transform_4(%arg0: i32) -> (i32, i32) {
    %c0_i32 = arith.constant 0 : i32
    %c0_i32_0 = arith.constant 0 : i32
    %c0_i32_1 = arith.constant 0 : i32
    return %c0_i32, %c0_i32_0 : i32, i32
  }
  func.func @transform_5(%arg0: i32) -> (i32, i32) {
    %c0_i32 = arith.constant 0 : i32
    %c0_i32_0 = arith.constant 0 : i32
    return %c0_i32, %arg0 : i32, i32
  }
}

</mosaic_0001>

<bundles_post_ra>
// kernel: tpu_custom_call.1
= control target key start
LH: loop header
LB: loop body
LE: loop exit
PB: predicated region body
PF: predicated region fallthrough
CT: control target
= control target key end

     0   :  { %10 = vsyncpa [#allocation3], 0  ;;  %s759_s0 = inlined_call_operand.hbm [shape: f32[2,32], index: 0, kind: input, shape index: {}]   ;;  %s760_s1 = inlined_call_operand.vmem [shape: f32[32,32], index: 1, kind: input, shape index: {}]   ;;  %s761_s2 = inlined_call_operand.vmem [shape: f32[32,1], index: 2, kind: input, shape index: {}]   ;;  %s762_s3 = inlined_call_operand.vmem [shape: f32[32,32], index: 3, kind: input, shape index: {}]   ;;  %s763_s4 = inlined_call_operand.vmem [shape: f32[32,1], index: 4, kind: input, shape index: {}]   ;;  %s764_s5 = inlined_call_operand.hbm [shape: f32[1,2], index: 5, kind: output, shape index: {}]  }
   0x1   :  { %11 = vsyncpa [#allocation4], 0  ;;  %s625_s18 = smov [#allocation2]   ;;  %s577_s22 = scalar_lea.hbm %s759_s0, 32 }
   0x2   :  { %s18_s19 = sshll.u32 %s625_s18, 4  ;;  %p578_p0 = scmp.ne.s32.totalorder %s759_s0, %s577_s22  ;;  %s19_s19 = int_to_ptr.vmem [resolvable:$true] %s18_s19 }
   0x3   :  { %p581_p1 = scmp.lt.u32.totalorder %s577_s22, %s759_s0 }
   0x5   :  { %p583_p2 = pnand %p581_p1, %p578_p0 }
   0x7   :  { %586 = shalt.err (!%p583_p2)
}
   0x8   :  { %s587_s27 = scalar_lea.vmem %s19_s19, 32  ;;  %p592_p4 = scmp.lt.s32.totalorder %s19_s19, %s19_s19 }
   0x9   :  { %p588_p3 = scmp.ne.s32.totalorder %s19_s19, %s587_s27  ;;  %p593_p5 = scmp.lt.s32.totalorder %s587_s27, %s587_s27 }
   0xb   :  { %p594_p6 = por %p593_p5, %p592_p4 }
   0xd   :  { %p595_p7 = pnand %p594_p6, %p588_p3 }
   0xf   :  { %598 = shalt.err (!%p595_p7)
}
  0x10   :  { %21 = dma.hbm_to_vmem [thread:$0]  %s759_s0, 32, %s19_s19, [#allocation3]  }
  0x11   :  { %621 = dma.done.wait [#allocation3], 32  }
  0x12   :  { %622 = vsyncadd [#allocation3], 4294967264  ;;  %v626_v0 = vmov 0   ;;  %vm53_vm0 = vcmask 261120   ;;  %v33_v1 = vld [vmem:[#allocation2] sm:$0x3]  ;;  %v34_v14 = vlaneseq }
  0x13   :  { %565 = vset.pattern.permute.xlu0 %v626_v0  ;;  %566 = vset.pattern.permute.xlu1 %v626_v0  ;;  %v154_v2 = vld [vmem:[%s760_s1] sm:$0xff]  ;;  %v155_v4 = vld [vmem:[%s760_s1 + $0x8] sm:$0xff]  ;;  %v160_v5 = vld [vmem:[%s761_s2 + $0x10] sm:$0xff]  ;;  %v627_v18 = vmov 0.0   ;;  %vm408_vm5 = vcmask 15360   ;;  %vm466_vm6 = vcmask 8192  }
  0x14   :  { %527 = vmatprep.subr.msk.mxu1 %vm53_vm0, %v33_v1  ;;  %529 = vmatprep.mubr.msk.f32.mxu1 %vm53_vm0, %v154_v2  ;;  %v158_v3 = vld [vmem:[%s761_s2] sm:$0xff]  ;;  %v156_v6 = vld [vmem:[%s760_s1 + $0x10] sm:$0xff]  ;;  %v159_v7 = vld [vmem:[%s761_s2 + $0x8] sm:$0xff]  ;;  %v35_v15 = vshrl.u32 %v34_v14, 7  ;;  %v40_v16 = vand.u32 127, %v34_v14 }
  0x15   :  { %528 = vmatpush3.xpose.msk.msra.mxu1 %vm53_vm0, %v33_v1  ;;  %164 = vperm.xlu0 %565, %v158_v3   ;;  %v161_v8 = vld [vmem:[%s761_s2 + $0x18] sm:$0xff]  ;;  %v287_v10 = vld [vmem:[%s763_s4] sm:$0xff]  ;;  %v288_v11 = vld [vmem:[%s763_s4 + $0x8] sm:$0xff] }
  0x16   :  { %174 = vperm.xlu1 %566, %v160_v5   ;;  %519 = vmatprep.subr.msk.mxu0 %vm53_vm0, %v33_v1  ;;  %v157_v9 = vld [vmem:[%s760_s1 + $0x18] sm:$0xff]  ;;  %v289_v12 = vld [vmem:[%s763_s4 + $0x10] sm:$0xff]  ;;  %v36_v17 = vadd.s32 8, %v35_v15  ;;  %vm41_vm1 = vcmp.eq.s32.totalorder %v35_v15, %v40_v16  ;;  %v37_v21 = vadd.s32 16, %v35_v15  ;;  %v38_v22 = vadd.s32 24, %v35_v15  ;;  %v283_v25 = vld [vmem:[%s762_s3] sm:$0xff] }
  0x17   :  { %520 = vmatpush3.xpose.msk.msra.mxu0 %vm53_vm0, %v33_v1  ;;  %v290_v13 = vld [vmem:[%s763_s4 + $0x18] sm:$0xff]  ;;  %v483_v19 = vsel %vm41_vm1, 1.0, %v627_v18  ;;  %v285_v26 = vld [vmem:[%s762_s3 + $0x10] sm:$0xff]  ;;  %v284_v45 = vld [vmem:[%s762_s3 + $0x8] sm:$0xff] }
  0x18   :  { %530 = vmatmul.mubr.msk.f32.vlgmr.msra.gmra.mrb[0].mxu1 %vm53_vm0, %v155_v4  ;;  %vm42_vm2 = vcmp.eq.s32.totalorder %v36_v17, %v40_v16  ;;  %521 = vmatprep.mubr.msk.f32.mxu0 %vm53_vm0, %v483_v19  ;;  %vm43_vm3 = vcmp.eq.s32.totalorder %v37_v21, %v40_v16  ;;  %vm44_vm4 = vcmp.eq.s32.totalorder %v38_v22, %v40_v16  ;;  %v286_v46 = vld [vmem:[%s762_s3 + $0x18] sm:$0xff]  ;;  %s628_s3 = smov [#allocation5]  }
  0x19   :  { %532 = vmatprep.mubr.msk.f32.mxu1 %vm53_vm0, %v156_v6  ;;  %169 = vperm.xlu0 %565, %v159_v7   ;;  %v484_v20 = vsel %vm42_vm2, 1.0, %v627_v18  ;;  %v485_v23 = vsel %vm43_vm3, 1.0, %v627_v18  ;;  %v486_v24 = vsel %vm44_vm4, 1.0, %v627_v18  ;;  %s474_s8 = sshll.u32 %s628_s3, 4  ;;  %s475_s8 = int_to_ptr.vmem [resolvable:$true] %s474_s8 }
  0x1a   :  { %179 = vperm.xlu1 %566, %v161_v8   ;;  %522 = vmatmul.mubr.msk.f32.vlgmr.msra.gmra.mrb[0].mxu0 %vm53_vm0, %v484_v20  ;;  %s599_s0 = scalar_lea.vmem %s475_s8, 16  ;;  %s603_s9 = scalar_lea.vmem %s475_s8, 32 }
  0x1b   :  { %524 = vmatprep.mubr.msk.f32.mxu0 %vm53_vm0, %v485_v23  ;;  %p600_p8 = scmp.ne.s32.totalorder %s475_s8, %s599_s0  ;;  %p604_p9 = scmp.lt.s32.totalorder %s475_s8, %s475_s8 }
  0x1c   :  { %533 = vmatmul.mubr.msk.f32.gmra.mrb[2].mxu1 %vm53_vm0, %v157_v9  ;;  %p605_p10 = scmp.lt.s32.totalorder %s603_s9, %s599_s0 }
  0x1d   :  { %293 = vperm.xlu0 %565, %v287_v10   ;;  %546 = vmatprep.mubr.msk.f32.mxu1 %vm53_vm0, %v285_v26 }
  0x1e   :  { %298 = vperm.xlu1 %566, %v288_v11   ;;  %525 = vmatmul.mubr.msk.f32.gmra.mrb[2].mxu0 %vm53_vm0, %v486_v24  ;;  %p606_p11 = por %p605_p10, %p604_p9 }
  0x1f   :  { %543 = vmatprep.mubr.msk.f32.mxu0 %vm53_vm0, %v283_v25 }
  0x20   :  { %p607_p12 = pnand %p606_p11, %p600_p8 }
  0x21   :  { %303 = vperm.xlu0 %565, %v289_v12  }
  0x22   :  { %308 = vperm.xlu1 %566, %v290_v13  }
  0x94   :  { %v165_v27 = vpop.permute.xlu0 %164 }
  0x95   :  { %v175_v28 = vpop.permute.xlu1 %174 }
  0x98   :  { %v170_v29 = vpop.permute.xlu0 %169 }
  0x99   :  { %v180_v35 = vpop.permute.xlu1 %179 }
  0x9c   :  { %v294_v51 = vpop.permute.xlu0 %293 }
  0x9d   :  { %v299_v52 = vpop.permute.xlu1 %298 }
  0xa0   :  { %v304_v53 = vpop.permute.xlu0 %303 }
  0xa1   :  { %v309_v54 = vpop.permute.xlu1 %308 }
  0xeb   :  { %v531_v30 = vpop.f32.mrb[0].mxu1 }
  0xec   :  { %v266_v31 = vadd.f32 %v531_v30, %v170_v29  ;;  %v260_v32 = vpop.f32.mrb[1].mxu1 }
  0xed   :  { %v261_v33 = vadd.f32 %v260_v32, %v165_v27  ;;  %v523_v47 = vpop.f32.mrb[0].mxu0 }
  0xee   :  { %v280_v34 = vmax.f32 %v266_v31, 0.0  ;;  %v135_v48 = vpop.f32.mrb[1].mxu0 }
  0xef   :  { %v279_v36 = vmax.f32 %v261_v33, 0.0  ;;  %v534_v37 = vpop.f32.mrb[2].mxu1 }
  0xf0   :  { %v276_v38 = vadd.f32 %v534_v37, %v180_v35  ;;  %v270_v39 = vpop.f32.mrb[3].mxu1 }
  0xf1   :  { %v549_v40 = vpack.c.bf16 %v280_v34, %v279_v36  ;;  %v271_v41 = vadd.f32 %v270_v39, %v175_v28  ;;  %v526_v49 = vpop.f32.mrb[2].mxu0 }
  0xf2   :  { %v282_v42 = vmax.f32 %v276_v38, 0.0  ;;  %v145_v50 = vpop.f32.mrb[3].mxu0 }
  0xf3   :  { %v281_v43 = vmax.f32 %v271_v41, 0.0  ;;  %550 = vmatprep.subr.bf16.mxu0 %v549_v40  ;;  %557 = vmatprep.subr.bf16.mxu1 %v549_v40 }
  0xf4   :  { %552 = vmatpush3.bf16.msra.mxu0 %v549_v40  ;;  %559 = vmatpush3.bf16.msra.mxu1 %v549_v40 }
  0xf5   :  { %v553_v44 = vpack.c.bf16 %v282_v42, %v281_v43 }
  0xf7   :  { %554 = vmatprep.subr.bf16.mxu0 %v553_v44  ;;  %558 = vmatprep.subr.bf16.mxu1 %v553_v44 }
  0xf8   :  { %556 = vmatpush3.bf16.msra.mxu0 %v553_v44  ;;  %560 = vmatpush3.bf16.msra.mxu1 %v553_v44 }
  0xfb   :  { %544 = vmatmul.mubr.msk.f32.vlgmr.msra.gmra.mrb[4].mxu0 %vm53_vm0, %v284_v45  ;;  %547 = vmatmul.mubr.msk.f32.vlgmr.msra.gmra.mrb[4].mxu1 %vm53_vm0, %v286_v46 }
 0x1ce   :  { %v545_v55 = vpop.f32.mrb[4].mxu0  ;;  %v548_v56 = vpop.f32.mrb[4].mxu1 }
 0x1cf   :  { %v395_v57 = vadd.f32 %v545_v55, %v299_v52  ;;  %v405_v58 = vadd.f32 %v548_v56, %v309_v54  ;;  %v389_v59 = vpop.f32.mrb[5].mxu0  ;;  %v399_v60 = vpop.f32.mrb[5].mxu1 }
 0x1d0   :  { %v390_v61 = vadd.f32 %v389_v59, %v294_v51  ;;  %v400_v62 = vadd.f32 %v399_v60, %v304_v53 }
 0x1d1   :  { %v410_v63 = vsel %vm408_vm5, %v395_v57, -inf  ;;  %v412_v0 = vsel %vm408_vm5, %v405_v58, -inf }
 0x1d2   :  { %v409_v1 = vsel %vm408_vm5, %v390_v61, -inf  ;;  %v411_v2 = vsel %vm408_vm5, %v400_v62, -inf }
 0x1d3   :  { %v413_v3 = vmax.f32 %v409_v1, %v410_v63  ;;  %v414_v4 = vmax.f32 %v411_v2, %v412_v0 }
 0x1d5   :  { %v415_v5 = vmax.f32 %v413_v3, %v414_v4 }
 0x1d7   :  { %v416_v6 = vrot.slane %v415_v5, 4 }
 0x1d9   :  { %v417_v7 = vmax.f32 %v415_v5, %v416_v6 }
 0x1db   :  { %v418_v8 = vrot.slane %v417_v7, 2 }
 0x1dd   :  { %v419_v9 = vmax.f32 %v417_v7, %v418_v8 }
 0x1df   :  { %v420_v10 = vrot.slane %v419_v9, 1 }
 0x1e1   :  { %v421_v11 = vmax.f32 %v419_v9, %v420_v10 }
 0x1e3   :  { %v422_v12 = vsub.f32 %v390_v61, %v421_v11  ;;  %v423_v13 = vsub.f32 %v395_v57, %v421_v11  ;;  %v424_v14 = vsub.f32 %v400_v62, %v421_v11  ;;  %v425_v15 = vsub.f32 %v405_v58, %v421_v11 }
 0x1e5   :  { %v426_v16 = vmul.f32 1.442695, %v422_v12  ;;  %v428_v17 = vmul.f32 1.442695, %v423_v13  ;;  %v430_v18 = vmul.f32 1.442695, %v424_v14 }
 0x1e6   :  { %v432_v19 = vmul.f32 1.442695, %v425_v15 }
 0x1e7   :  { %567 = vpow2.f32 %v426_v16 }
 0x1e8   :  { %569 = vpow2.f32 %v428_v17 }
 0x1e9   :  { %571 = vpow2.f32 %v430_v18 }
 0x1ea   :  { %573 = vpow2.f32 %v432_v19 }
 0x1f1   :  { %v568_v20 = vpop.eup %567 }
 0x1f2   :  { %v570_v21 = vpop.eup %569  ;;  %v451_v22 = vsel %vm408_vm5, %v568_v20, 0.0  ;;  %v434_v23 = vmul.f32 %v568_v20, %v135_v48 }
 0x1f3   :  { %v572_v24 = vpop.eup %571  ;;  %v452_v25 = vsel %vm408_vm5, %v570_v21, 0.0  ;;  %v435_v26 = vmul.f32 %v570_v21, %v523_v47 }
 0x1f4   :  { %v574_v27 = vpop.eup %573  ;;  %v436_v28 = vmul.f32 %v572_v24, %v145_v50  ;;  %v453_v29 = vadd.f32 %v452_v25, %v451_v22  ;;  %v438_v30 = vsel %vm408_vm5, %v434_v23, 0.0  ;;  %v454_v31 = vsel %vm408_vm5, %v572_v24, 0.0 }
 0x1f5   :  { %v437_v32 = vmul.f32 %v574_v27, %v526_v49  ;;  %v439_v33 = vsel %vm408_vm5, %v435_v26, 0.0  ;;  %v456_v37 = vsel %vm408_vm5, %v574_v27, 0.0 }
 0x1f6   :  { %v455_v34 = vadd.f32 %v454_v31, %v453_v29  ;;  %v440_v35 = vadd.f32 %v439_v33, %v438_v30  ;;  %v441_v36 = vsel %vm408_vm5, %v436_v28, 0.0 }
 0x1f7   :  { %v443_v40 = vsel %vm408_vm5, %v437_v32, 0.0 }
 0x1f8   :  { %v457_v38 = vadd.f32 %v456_v37, %v455_v34  ;;  %v442_v39 = vadd.f32 %v441_v36, %v440_v35 }
 0x1fa   :  { %v458_v41 = vrot.slane %v457_v38, 4  ;;  %v444_v42 = vadd.f32 %v443_v40, %v442_v39 }
 0x1fc   :  { %v459_v43 = vadd.f32 %v458_v41, %v457_v38  ;;  %v445_v44 = vrot.slane %v444_v42, 4 }
 0x1fe   :  { %v460_v45 = vrot.slane %v459_v43, 2  ;;  %v446_v46 = vadd.f32 %v445_v44, %v444_v42 }
 0x200   :  { %v461_v47 = vadd.f32 %v460_v45, %v459_v43  ;;  %v447_v49 = vrot.slane %v446_v46, 2 }
 0x202   :  { %v462_v48 = vrot.slane %v461_v47, 1  ;;  %v448_v51 = vadd.f32 %v447_v49, %v446_v46 }
 0x204   :  { %v463_v50 = vadd.f32 %v462_v48, %v461_v47  ;;  %v449_v52 = vrot.slane %v448_v51, 1 }
 0x206   :  { %575 = vrcp.f32 %v463_v50  ;;  %v450_v53 = vadd.f32 %v449_v52, %v448_v51 }
 0x210   :  { %v576_v54 = vpop.eup %575 }
 0x211   :  { %v465_v55 = vmul.f32 %v576_v54, %v450_v53 }
 0x213   :  { %467 = vst.msk [vmem:[#allocation5] sm:$0x1] %vm466_vm6, %v465_v55 }
 0x214   :  { %610 = shalt.err (!%p607_p12)
}
 0x215   :  { %s611_s12 = scalar_lea.hbm %s764_s5, 16 }
 0x216   :  { %p612_p13 = scmp.ne.s32.totalorder %s764_s5, %s611_s12  ;;  %p615_p0 = scmp.lt.u32.totalorder %s611_s12, %s764_s5 }
 0x218   :  { %p617_p1 = pnand %p615_p0, %p612_p13 }
 0x21a   :  { %620 = shalt.err (!%p617_p1)
}
 0x21b   :  { %477 = dma.vmem_to_hbm [thread:$0]  %s475_s8, 16, %s764_s5, [#allocation4]  }
 0x21c   :  { %623 = dma.done.wait [#allocation4], 16  }
 0x21d   :  { %624 = vsyncadd [#allocation4], 4294967280 }
 0x21e   :  { %481 = vsyncpa [#allocation3], 1 }
 0x21f   :  { %482 = vsyncpa [#allocation4], 1 }

</bundles_post_ra>
